<compile_context>
chip_gen: v6e
topology: v6e:2x2x1
jax: 0.10.0
libtpu: 0.0.40
codegen_flags: <defaults>
</compile_context>

<pallas_src>
import functools

import jax
import jax.numpy as jnp
from jax.experimental import pallas as pl
from jax.experimental.pallas import tpu as pltpu

BN_EPS = 1e-5
LANE = 128                    # pad every feature dim to a multiple of this
MXU_STATS_MIN_BATCH = 128     # use ones-vector matmul for BN column sums at/above this


def _pad_to(n, m=LANE):
    return ((n + m - 1) // m) * m


# ---------------------------------------------------------------------------
# Fused Pallas kernel (entire network in one call)
# ---------------------------------------------------------------------------
def _make_fused_mlp_kernel(num_layers, batch, act_dtype):
    """Kernel ref order: x,
                         [w_0, packed_0(bias/gamma/beta)], ... per hidden layer,
                         w_last, b_last,
                         o_ref."""
    inv_n = 1.0 / batch                     # precomputed; no per-layer divides
    use_mxu_stats = batch >= MXU_STATS_MIN_BATCH

    def colsum(v):
        # Column (axis-0) sums.  At large batch, move the sublane reduction off
        # the XLU and onto the otherwise-idle MXU slot via a ones-vector matmul.
        if use_mxu_stats:
            ones = jnp.ones((1, v.shape[0]), jnp.float32)
            return jnp.dot(ones, v, preferred_element_type=jnp.float32)
        return jnp.sum(v, axis=0, keepdims=True)

    def kernel(*refs):
        x_ref = refs[0]
        o_ref = refs[-1]
        param_refs = refs[1:-1]

        x = x_ref[...]                      # f32, full (padded-lane) batch block
        ridx = 0
        for _ in range(num_layers - 1):
            w = param_refs[ridx][...]                    # (fan_in_pad, fan_out_pad)
            packed = param_refs[ridx + 1][...]           # (3, fan_out_pad) f32
            ridx += 2
            b = packed[0:1, :]
            gamma = packed[1:2, :]
            beta = packed[2:3, :]

            # Linear (MXU, f32 accumulation) + bias, then ReLU.
            y = jnp.dot(x.astype(act_dtype), w,
                        preferred_element_type=jnp.float32) + b
            y = jnp.maximum(y, 0.0)

            # BatchNorm1d, training-mode batch statistics (biased variance).
            mean = colsum(y) * inv_n
            diff = y - mean
            var = colsum(diff * diff) * inv_n
            # Fold gamma into the per-channel rsqrt scale (row op) — saves one
            # full (batch, out) VPU multiply per hidden layer.
            scale = jax.lax.rsqrt(var + BN_EPS) * gamma
            x = diff * scale + beta

        # Final layer: Linear only.
        w = param_refs[ridx][...]
        b = param_refs[ridx + 1][...]
        o_ref[...] = jnp.dot(x.astype(act_dtype), w,
                             preferred_element_type=jnp.float32) + b

    return kernel


def _vmem_spec():
    return pl.BlockSpec(memory_space=pltpu.VMEM)


# ---------------------------------------------------------------------------
# Single-jit forward over the fused kernel
# ---------------------------------------------------------------------------
@functools.partial(jax.jit, static_argnames=("in_features", "out_features"))
def linear_network_forward(params, x, in_features, out_features):
    """Matches LinearNetwork.forward:
       x = x.view(-1, in_features)
       for idx in range(num_layers - 1): x = bn(relu(linear(x)))
       x = linear[-1](x)
    Feature dims are lane-padded to 128 internally; output sliced back."""
    x = x.reshape(-1, in_features).astype(jnp.float32)
    batch = x.shape[0]
    in_pad = params[0]["w"].shape[0]
    if in_pad != in_features:
        x = jnp.pad(x, ((0, 0), (0, in_pad - in_features)))   # zero cols are inert

    num_layers = len(params)
    inputs = [x]
    for idx in range(num_layers - 1):
        inputs.append(params[idx]["w"])       # (fan_in_pad, fan_out_pad), bf16/f32
        inputs.append(params[idx]["bgb"])     # (3, fan_out_pad) f32: bias/gamma/beta
    inputs.append(params[-1]["w"])
    inputs.append(params[-1]["b"])

    out_pad = params[-1]["w"].shape[1]
    act_dtype = params[0]["w"].dtype

    # Scheduler hint + VMEM budget (everything resident, no grid).
    flops = sum(2 * batch * p["w"].shape[0] * p["w"].shape[1] for p in params)
    transcendentals = sum(p["w"].shape[1] for p in params[:-1])   # rsqrt per channel
    bytes_accessed = (sum(int(a.size) * a.dtype.itemsize for a in inputs)
                      + batch * out_pad * 4)
    max_width = max(in_pad, *(int(p["w"].shape[1]) for p in params))
    resident_bytes = bytes_accessed + 4 * (batch * max_width * 4)  # live intermediates
    vmem_limit = int(min(max(2 * resident_bytes, 4 << 20), 64 << 20))  # v7x-safe cap

    out = pl.pallas_call(
        _make_fused_mlp_kernel(num_layers, batch, act_dtype),
        out_shape=jax.ShapeDtypeStruct((batch, out_pad), jnp.float32),
        in_specs=[_vmem_spec()] * len(inputs),
        out_specs=_vmem_spec(),
        cost_estimate=pl.CostEstimate(flops=int(flops),
                                      transcendentals=int(transcendentals),
                                      bytes_accessed=int(bytes_accessed)),
        compiler_params=pltpu.CompilerParams(vmem_limit_bytes=vmem_limit),
    )(*inputs)
    return out[:, :out_features]


# ---------------------------------------------------------------------------
# Parameter init (PyTorch nn.Linear / nn.BatchNorm1d defaults), lane-padded
# ---------------------------------------------------------------------------
def init_linear_network(key, in_features, num_layers, num_hidden_list,
                        weight_dtype=jnp.bfloat16):
    """Weights uniform(-1/sqrt(fan_in), 1/sqrt(fan_in)); BN gamma=1, beta=0.
    All feature dims zero-padded to multiples of 128; padded channels carry
    gamma=0 / beta=0 so they stay exactly zero through every layer."""
    params = []
    dims = [in_features] + list(num_hidden_list)
    for idx in range(num_layers):
        fan_in, fan_out = dims[idx], dims[idx + 1]
        fan_in_pad, fan_out_pad = _pad_to(fan_in), _pad_to(fan_out)
        key, kw, kb = jax.random.split(key, 3)
        bound = 1.0 / (fan_in ** 0.5)                 # true fan_in, as in PyTorch
        # Stored [in, out] (transpose of PyTorch's [out, in]); math identical.
        w = jax.random.uniform(kw, (fan_in, fan_out), jnp.float32, -bound, bound)
        b = jax.random.uniform(kb, (1, fan_out), jnp.float32, -bound, bound)
        w_p = jnp.zeros((fan_in_pad, fan_out_pad), jnp.float32)
        w_p = w_p.at[:fan_in, :fan_out].set(w)
        b_p = jnp.zeros((1, fan_out_pad), jnp.float32).at[:, :fan_out].set(b)
        if idx < num_layers - 1:   # hidden layer: pack bias + BN params
            gamma_p = jnp.zeros((1, fan_out_pad), jnp.float32).at[:, :fan_out].set(1.0)
            beta_p = jnp.zeros((1, fan_out_pad), jnp.float32)
            bgb = jnp.concatenate([b_p, gamma_p, beta_p], axis=0)
            params.append({"w": w_p.astype(weight_dtype), "bgb": bgb})
        else:
            params.append({"w": w_p.astype(weight_dtype), "b": b_p})
    return params


# ---------------------------------------------------------------------------
# Pure-JAX reference (mirrors the kernel's MXU-boundary dtype casting)
# ---------------------------------------------------------------------------
def _reference_forward(params, x, in_features, out_features):
    x = x.reshape(-1, in_features).astype(jnp.float32)
    in_pad = params[0]["w"].shape[0]
    if in_pad != in_features:
        x = jnp.pad(x, ((0, 0), (0, in_pad - in_features)))
    wd = params[0]["w"].dtype
    num_layers = len(params)
    for idx in range(num_layers - 1):
        p = params[idx]
        b, gamma, beta = p["bgb"][0:1], p["bgb"][1:2], p["bgb"][2:3]
        y = jnp.dot(x.astype(wd), p["w"], preferred_element_type=jnp.float32) + b
        y = jnp.maximum(y, 0.0)
        mean = jnp.mean(y, axis=0, keepdims=True)
        var = jnp.mean((y - mean) ** 2, axis=0, keepdims=True)
        x = (y - mean) / jnp.sqrt(var + BN_EPS) * gamma + beta
    p = params[-1]
    out = jnp.dot(x.astype(wd), p["w"], preferred_element_type=jnp.float32) + p["b"]
    return out[:, :out_features]


if __name__ == "__main__":
    # Small config consistent with the module's constructor args.
    in_features = 32
    num_layers = 3
    num_hidden_list = [64, 64, 16]

    key = jax.random.PRNGKey(0)
    key, pkey, xkey = jax.random.split(key, 3)
    # Input: arbitrary leading shape, flattened to (-1, in_features) -> (8, 32).
    x = jax.random.normal(xkey, (8, 4, 8), dtype=jnp.float32)

    # (a) f32 weights: tight exactness check of the fused kernel math.
    params_f32 = init_linear_network(pkey, in_features, num_layers,
                                     num_hidden_list, weight_dtype=jnp.float32)
    out = jax.block_until_ready(
        linear_network_forward(params_f32, x, in_features, num_hidden_list[-1]))
    ref = _reference_forward(params_f32, x, in_features, num_hidden_list[-1])
    assert out.shape == (8, num_hidden_list[-1]), out.shape
    assert jnp.allclose(out, ref, atol=1e-4, rtol=1e-4), "f32 mismatch vs reference"

    # (b) bf16 weights (perf-recommended on v6e/v7x): f32 MXU accumulation.
    params_bf16 = init_linear_network(pkey, in_features, num_layers,
                                      num_hidden_list, weight_dtype=jnp.bfloat16)
    out = jax.block_until_ready(
        linear_network_forward(params_bf16, x, in_features, num_hidden_list[-1]))
    ref = _reference_forward(params_bf16, x, in_features, num_hidden_list[-1])
    assert out.shape == (8, num_hidden_list[-1]), out.shape
    assert jnp.allclose(out, ref, atol=5e-3, rtol=5e-3), "bf16 mismatch vs reference"

    print("KERNEL_OK")
</pallas_src>

<mosaic_0001>
module attributes {stable_mosaic.version = 11 : i64} {
  func.func @kernel(%arg0: memref<8x128xf32, #tpu.memory_space<vmem>>, %arg1: memref<128x128xf32, #tpu.memory_space<vmem>>, %arg2: memref<3x128xf32, #tpu.memory_space<vmem>>, %arg3: memref<128x128xf32, #tpu.memory_space<vmem>>, %arg4: memref<3x128xf32, #tpu.memory_space<vmem>>, %arg5: memref<128x128xf32, #tpu.memory_space<vmem>>, %arg6: memref<1x128xf32, #tpu.memory_space<vmem>>, %arg7: memref<8x128xf32, #tpu.memory_space<vmem>>) attributes {dimension_semantics = [], scalar_prefetch = 0 : i64, scratch_operands = 0 : i64, tpu.core_type = #tpu.core_type<tc>} {
    %c0 = arith.constant 0 : index
    %c0_0 = arith.constant 0 : index
    %0 = vector.load %arg0[%c0, %c0_0] : memref<8x128xf32, #tpu.memory_space<vmem>>, vector<8x128xf32>
    %c0_1 = arith.constant 0 : index
    %c0_2 = arith.constant 0 : index
    %1 = vector.load %arg1[%c0_1, %c0_2] : memref<128x128xf32, #tpu.memory_space<vmem>>, vector<128x128xf32>
    %c0_3 = arith.constant 0 : index
    %c0_4 = arith.constant 0 : index
    %2 = vector.load %arg2[%c0_3, %c0_4] : memref<3x128xf32, #tpu.memory_space<vmem>>, vector<3x128xf32>
    %3 = vector.extract_strided_slice %2 {offsets = [0, 0], sizes = [1, 128], strides = [1, 1]} : vector<3x128xf32> to vector<1x128xf32>
    %4 = vector.extract_strided_slice %2 {offsets = [1, 0], sizes = [1, 128], strides = [1, 1]} : vector<3x128xf32> to vector<1x128xf32>
    %5 = vector.extract_strided_slice %2 {offsets = [2, 0], sizes = [1, 128], strides = [1, 1]} : vector<3x128xf32> to vector<1x128xf32>
    %cst = arith.constant dense<0.000000e+00> : vector<8x128xf32>
    %6 = tpu.matmul %0, %1, %cst {dimension_numbers = #tpu.dot_dimension_numbers<[1], [0], [0], [1], [0, 0, 1, 1], [], []>} : vector<8x128xf32>, vector<128x128xf32>, vector<8x128xf32> -> vector<8x128xf32>
    %7 = vector.broadcast %3 : vector<1x128xf32> to vector<8x128xf32>
    %8 = arith.addf %6, %7 : vector<8x128xf32>
    %cst_5 = arith.constant 0.000000e+00 : f32
    %9 = vector.broadcast %cst_5 : f32 to vector<8x128xf32>
    %10 = arith.maximumf %8, %9 : vector<8x128xf32>
    %cst_6 = arith.constant dense<0.000000e+00> : vector<128xf32>
    %11 = vector.multi_reduction <add>, %10, %cst_6 [0] : vector<8x128xf32> to vector<128xf32>
    %12 = vector.shape_cast %11 : vector<128xf32> to vector<1x128xf32>
    %cst_7 = arith.constant 1.250000e-01 : f32
    %13 = vector.broadcast %cst_7 : f32 to vector<1x128xf32>
    %14 = arith.mulf %12, %13 : vector<1x128xf32>
    %15 = vector.broadcast %14 : vector<1x128xf32> to vector<8x128xf32>
    %16 = arith.subf %10, %15 : vector<8x128xf32>
    %17 = arith.mulf %16, %16 : vector<8x128xf32>
    %cst_8 = arith.constant dense<0.000000e+00> : vector<128xf32>
    %18 = vector.multi_reduction <add>, %17, %cst_8 [0] : vector<8x128xf32> to vector<128xf32>
    %19 = vector.shape_cast %18 : vector<128xf32> to vector<1x128xf32>
    %cst_9 = arith.constant 1.250000e-01 : f32
    %20 = vector.broadcast %cst_9 : f32 to vector<1x128xf32>
    %21 = arith.mulf %19, %20 : vector<1x128xf32>
    %cst_10 = arith.constant 9.99999974E-6 : f32
    %22 = vector.broadcast %cst_10 : f32 to vector<1x128xf32>
    %23 = arith.addf %21, %22 : vector<1x128xf32>
    %24 = math.rsqrt %23 : vector<1x128xf32>
    %25 = arith.mulf %24, %4 : vector<1x128xf32>
    %26 = vector.broadcast %25 : vector<1x128xf32> to vector<8x128xf32>
    %27 = arith.mulf %16, %26 : vector<8x128xf32>
    %28 = vector.broadcast %5 : vector<1x128xf32> to vector<8x128xf32>
    %29 = arith.addf %27, %28 : vector<8x128xf32>
    %c0_11 = arith.constant 0 : index
    %c0_12 = arith.constant 0 : index
    %30 = vector.load %arg3[%c0_11, %c0_12] : memref<128x128xf32, #tpu.memory_space<vmem>>, vector<128x128xf32>
    %c0_13 = arith.constant 0 : index
    %c0_14 = arith.constant 0 : index
    %31 = vector.load %arg4[%c0_13, %c0_14] : memref<3x128xf32, #tpu.memory_space<vmem>>, vector<3x128xf32>
    %32 = vector.extract_strided_slice %31 {offsets = [0, 0], sizes = [1, 128], strides = [1, 1]} : vector<3x128xf32> to vector<1x128xf32>
    %33 = vector.extract_strided_slice %31 {offsets = [1, 0], sizes = [1, 128], strides = [1, 1]} : vector<3x128xf32> to vector<1x128xf32>
    %34 = vector.extract_strided_slice %31 {offsets = [2, 0], sizes = [1, 128], strides = [1, 1]} : vector<3x128xf32> to vector<1x128xf32>
    %cst_15 = arith.constant dense<0.000000e+00> : vector<8x128xf32>
    %35 = tpu.matmul %29, %30, %cst_15 {dimension_numbers = #tpu.dot_dimension_numbers<[1], [0], [0], [1], [0, 0, 1, 1], [], []>} : vector<8x128xf32>, vector<128x128xf32>, vector<8x128xf32> -> vector<8x128xf32>
    %36 = vector.broadcast %32 : vector<1x128xf32> to vector<8x128xf32>
    %37 = arith.addf %35, %36 : vector<8x128xf32>
    %cst_16 = arith.constant 0.000000e+00 : f32
    %38 = vector.broadcast %cst_16 : f32 to vector<8x128xf32>
    %39 = arith.maximumf %37, %38 : vector<8x128xf32>
    %cst_17 = arith.constant dense<0.000000e+00> : vector<128xf32>
    %40 = vector.multi_reduction <add>, %39, %cst_17 [0] : vector<8x128xf32> to vector<128xf32>
    %41 = vector.shape_cast %40 : vector<128xf32> to vector<1x128xf32>
    %cst_18 = arith.constant 1.250000e-01 : f32
    %42 = vector.broadcast %cst_18 : f32 to vector<1x128xf32>
    %43 = arith.mulf %41, %42 : vector<1x128xf32>
    %44 = vector.broadcast %43 : vector<1x128xf32> to vector<8x128xf32>
    %45 = arith.subf %39, %44 : vector<8x128xf32>
    %46 = arith.mulf %45, %45 : vector<8x128xf32>
    %cst_19 = arith.constant dense<0.000000e+00> : vector<128xf32>
    %47 = vector.multi_reduction <add>, %46, %cst_19 [0] : vector<8x128xf32> to vector<128xf32>
    %48 = vector.shape_cast %47 : vector<128xf32> to vector<1x128xf32>
    %cst_20 = arith.constant 1.250000e-01 : f32
    %49 = vector.broadcast %cst_20 : f32 to vector<1x128xf32>
    %50 = arith.mulf %48, %49 : vector<1x128xf32>
    %cst_21 = arith.constant 9.99999974E-6 : f32
    %51 = vector.broadcast %cst_21 : f32 to vector<1x128xf32>
    %52 = arith.addf %50, %51 : vector<1x128xf32>
    %53 = math.rsqrt %52 : vector<1x128xf32>
    %54 = arith.mulf %53, %33 : vector<1x128xf32>
    %55 = vector.broadcast %54 : vector<1x128xf32> to vector<8x128xf32>
    %56 = arith.mulf %45, %55 : vector<8x128xf32>
    %57 = vector.broadcast %34 : vector<1x128xf32> to vector<8x128xf32>
    %58 = arith.addf %56, %57 : vector<8x128xf32>
    %c0_22 = arith.constant 0 : index
    %c0_23 = arith.constant 0 : index
    %59 = vector.load %arg5[%c0_22, %c0_23] : memref<128x128xf32, #tpu.memory_space<vmem>>, vector<128x128xf32>
    %c0_24 = arith.constant 0 : index
    %c0_25 = arith.constant 0 : index
    %60 = vector.load %arg6[%c0_24, %c0_25] : memref<1x128xf32, #tpu.memory_space<vmem>>, vector<1x128xf32>
    %cst_26 = arith.constant dense<0.000000e+00> : vector<8x128xf32>
    %61 = tpu.matmul %58, %59, %cst_26 {dimension_numbers = #tpu.dot_dimension_numbers<[1], [0], [0], [1], [0, 0, 1, 1], [], []>} : vector<8x128xf32>, vector<128x128xf32>, vector<8x128xf32> -> vector<8x128xf32>
    %62 = vector.broadcast %60 : vector<1x128xf32> to vector<8x128xf32>
    %63 = arith.addf %61, %62 : vector<8x128xf32>
    %c0_27 = arith.constant 0 : index
    %c0_28 = arith.constant 0 : index
    %64 = vector.load %arg7[%c0_27, %c0_28] : memref<8x128xf32, #tpu.memory_space<vmem>>, vector<8x128xf32>
    tpu.vector_store %arg7[%c0_27, %c0_28], %63 {strides = array<i32>} : memref<8x128xf32, #tpu.memory_space<vmem>>, vector<8x128xf32>,
    return
  }
}

</mosaic_0001>

<bundles_post_ra>
// kernel: linear_network_forward.1
= control target key start
LH: loop header
LB: loop body
LE: loop exit
PB: predicated region body
PF: predicated region fallthrough
CT: control target
= control target key end

     0   :  { %12 = vsyncpa [#allocation3], 0  ;;  %s819_s0 = inlined_call_operand.vmem [shape: f32[8,128], index: 0, kind: input, shape index: {}]   ;;  %s820_s1 = inlined_call_operand.hbm [shape: f32[128,128], index: 1, kind: input, shape index: {}]   ;;  %s821_s2 = inlined_call_operand.vmem [shape: f32[3,128], index: 2, kind: input, shape index: {}]   ;;  %s822_s3 = inlined_call_operand.hbm [shape: f32[128,128], index: 3, kind: input, shape index: {}]   ;;  %s823_s4 = inlined_call_operand.vmem [shape: f32[3,128], index: 4, kind: input, shape index: {}]   ;;  %s824_s5 = inlined_call_operand.hbm [shape: f32[128,128], index: 5, kind: input, shape index: {}]   ;;  %s825_s6 = inlined_call_operand.vmem [shape: f32[1,128], index: 6, kind: input, shape index: {}]   ;;  %s826_s7 = inlined_call_operand.hbm [shape: f32[8,128], index: 7, kind: output, shape index: {}]  }
   0x1   :  { %13 = vsyncpa [#allocation6], 0 }
   0x2   :  { %14 = vsyncpa [#allocation4], 0  ;;  %s676_s24 = smov [#allocation5]   ;;  %s677_s26 = smov [#allocation2]  }
   0x3   :  { %s36_s25 = sshll.u32 %s676_s24, 4  ;;  %s22_s27 = sshll.u32 %s677_s26, 4  ;;  %s37_s25 = int_to_ptr.vmem [resolvable:$true] %s36_s25  ;;  %s23_s27 = int_to_ptr.vmem [resolvable:$true] %s22_s27 }
   0x4   :  { %s598_s28 = scalar_lea.vmem %s37_s25, 2048  ;;  %p603_p1 = scmp.lt.s32.totalorder %s37_s25, %s37_s25 }
   0x5   :  { %p599_p0 = scmp.ne.s32.totalorder %s37_s25, %s598_s28  ;;  %p604_p2 = scmp.lt.s32.totalorder %s598_s28, %s598_s28 }
   0x7   :  { %p605_p3 = por %p604_p2, %p603_p1 }
   0x9   :  { %p606_p4 = pnand %p605_p3, %p599_p0 }
   0xb   :  { %609 = shalt.err (!%p606_p4)
}
   0xc   :  { %s678_s29 = smov 128   ;;  %s679_s30 = smov 8  }
   0xd   :  { %42 = dma.hbm_to_vmem [thread:$0]  %s822_s3, 2048, %s37_s25, [#allocation6], %s678_s29, %s678_s29, %s679_s30  }
   0xe   :  { %s618_s10 = scalar_lea.vmem %s23_s27, 2048  ;;  %p623_p6 = scmp.lt.s32.totalorder %s23_s27, %s23_s27 }
   0xf   :  { %p619_p5 = scmp.ne.s32.totalorder %s23_s27, %s618_s10  ;;  %p624_p7 = scmp.lt.s32.totalorder %s618_s10, %s618_s10 }
  0x11   :  { %p625_p8 = por %p624_p7, %p623_p6 }
  0x13   :  { %p626_p9 = pnand %p625_p8, %p619_p5 }
  0x15   :  { %629 = shalt.err (!%p626_p9)
}
  0x16   :  { %28 = dma.hbm_to_vmem [thread:$0]  %s820_s1, 2048, %s23_s27, [#allocation3], %s678_s29, %s678_s29, %s679_s30  }
  0x17   :  { %s680_s13 = smov [#allocation7]  }
  0x18   :  { %s50_s14 = sshll.u32 %s680_s13, 4  ;;  %s51_s14 = int_to_ptr.vmem [resolvable:$true] %s50_s14 }
  0x19   :  { %s638_s15 = scalar_lea.vmem %s51_s14, 2048  ;;  %p643_p11 = scmp.lt.s32.totalorder %s51_s14, %s51_s14 }
  0x1a   :  { %p639_p10 = scmp.ne.s32.totalorder %s51_s14, %s638_s15  ;;  %p644_p12 = scmp.lt.s32.totalorder %s638_s15, %s638_s15 }
  0x1c   :  { %p645_p13 = por %p644_p12, %p643_p11 }
  0x1e   :  { %p646_p0 = pnand %p645_p13, %p639_p10 }
  0x20   :  { %649 = shalt.err (!%p646_p0)
}
  0x21   :  { %56 = dma.hbm_to_vmem [thread:$0]  %s824_s5, 2048, %s51_s14, [#allocation6], %s678_s29, %s678_s29, %s679_s30  }
  0x22   :  { %670 = dma.done.wait [#allocation3], 2048  }
  0x23   :  { %671 = vsyncadd [#allocation3], 4294965248 }
  0x24   :  { %672 = dma.done.wait [#allocation6], 4096  }
  0x25   :  { %673 = vsyncadd [#allocation6], 4294963200  ;;  %v681_v0 = vmov 0.0   ;;  %vm682_vm0 = vmmov 0   ;;  %v84_v1 = vld [vmem:[#allocation2 + $0x78] sm:$0xff]  ;;  %v83_v2 = vld [vmem:[#allocation2 + $0x70] sm:$0xff]  ;;  %v86_v34 = vlaneseq }
  0x26   :  { %473 = vmatprep.subr.mxu0 %v681_v0  ;;  %505 = vmatprep.mubr.msk.f32.mxu0 %vm682_vm0, %v681_v0  ;;  %v82_v3 = vld [vmem:[#allocation2 + $0x68] sm:$0xff]  ;;  %v81_v4 = vld [vmem:[#allocation2 + $0x60] sm:$0xff]  ;;  %v80_v5 = vld [vmem:[#allocation2 + $0x58] sm:$0xff]  ;;  %s683_s20 = smov [#allocation8]  }
  0x27   :  { %508 = vmatprep.subr.mxu1 %v681_v0  ;;  %540 = vmatprep.mubr.msk.f32.mxu1 %vm682_vm0, %v681_v0  ;;  %v79_v6 = vld [vmem:[#allocation2 + $0x50] sm:$0xff]  ;;  %v78_v7 = vld [vmem:[#allocation2 + $0x48] sm:$0xff]  ;;  %v77_v8 = vld [vmem:[#allocation2 + $0x40] sm:$0xff]  ;;  %v775_v35 = vshrl.u32 %v86_v34, 7  ;;  %s411_s21 = sshll.u32 %s683_s20, 4  ;;  %s412_s21 = int_to_ptr.vmem [resolvable:$true] %s411_s21 }
  0x28   :  { %474 = vmatpush3.msra.mxu0 %v84_v1  ;;  %v76_v9 = vld [vmem:[#allocation2 + $0x38] sm:$0xff]  ;;  %v75_v10 = vld [vmem:[#allocation2 + $0x30] sm:$0xff]  ;;  %v74_v11 = vld [vmem:[#allocation2 + $0x28] sm:$0xff]  ;;  %s650_s22 = scalar_lea.vmem %s412_s21, 128  ;;  %p655_p2 = scmp.lt.s32.totalorder %s412_s21, %s412_s21 }
  0x29   :  { %475 = vmatprep.subr.mxu0 %v681_v0  ;;  %v73_v12 = vld [vmem:[#allocation2 + $0x20] sm:$0xff]  ;;  %v72_v13 = vld [vmem:[#allocation2 + $0x18] sm:$0xff]  ;;  %v71_v14 = vld [vmem:[#allocation2 + $0x10] sm:$0xff]  ;;  %v88_v36 = vsub.s32 0, %v775_v35  ;;  %v182_v60 = vsub.s32 1, %v775_v35  ;;  %v187_v61 = vsub.s32 2, %v775_v35  ;;  %p651_p1 = scmp.ne.s32.totalorder %s412_s21, %s650_s22  ;;  %p656_p3 = scmp.lt.s32.totalorder %s650_s22, %s650_s22 }
  0x2a   :  { %476 = vmatpush3.msra.mxu0 %v83_v2  ;;  %v70_v15 = vld [vmem:[#allocation2 + $0x8] sm:$0xff]  ;;  %v69_v16 = vld [vmem:[#allocation2] sm:$0xff]  ;;  %v205_v18 = vld [vmem:[#allocation5 + $0x78] sm:$0xff] }
  0x2b   :  { %477 = vmatprep.subr.mxu0 %v681_v0  ;;  %v68_v17 = vld [vmem:[%s819_s0] sm:$0xff]  ;;  %509 = vmatpush3.msra.mxu1 %v205_v18  ;;  %v204_v19 = vld [vmem:[#allocation5 + $0x70] sm:$0xff]  ;;  %v203_v20 = vld [vmem:[#allocation5 + $0x68] sm:$0xff]  ;;  %p657_p4 = por %p656_p3, %p655_p2 }
  0x2c   :  { %478 = vmatpush3.msra.mxu0 %v82_v3  ;;  %510 = vmatprep.subr.mxu1 %v681_v0  ;;  %v202_v21 = vld [vmem:[#allocation5 + $0x60] sm:$0xff]  ;;  %v201_v22 = vld [vmem:[#allocation5 + $0x58] sm:$0xff]  ;;  %v200_v23 = vld [vmem:[#allocation5 + $0x50] sm:$0xff] }
  0x2d   :  { %479 = vmatprep.subr.mxu0 %v681_v0  ;;  %511 = vmatpush3.msra.mxu1 %v204_v19  ;;  %v199_v24 = vld [vmem:[#allocation5 + $0x48] sm:$0xff]  ;;  %v198_v25 = vld [vmem:[#allocation5 + $0x40] sm:$0xff]  ;;  %v197_v26 = vld [vmem:[#allocation5 + $0x38] sm:$0xff]  ;;  %p658_p5 = pnand %p657_p4, %p651_p1 }
  0x2e   :  { %480 = vmatpush3.msra.mxu0 %v81_v4  ;;  %512 = vmatprep.subr.mxu1 %v681_v0  ;;  %v196_v27 = vld [vmem:[#allocation5 + $0x30] sm:$0xff]  ;;  %v195_v28 = vld [vmem:[#allocation5 + $0x28] sm:$0xff]  ;;  %v194_v29 = vld [vmem:[#allocation5 + $0x20] sm:$0xff] }
  0x2f   :  { %481 = vmatprep.subr.mxu0 %v681_v0  ;;  %513 = vmatpush3.msra.mxu1 %v203_v20  ;;  %v193_v30 = vld [vmem:[#allocation5 + $0x18] sm:$0xff]  ;;  %v192_v31 = vld [vmem:[#allocation5 + $0x10] sm:$0xff]  ;;  %v191_v32 = vld [vmem:[#allocation5 + $0x8] sm:$0xff] }
  0x30   :  { %482 = vmatpush3.msra.mxu0 %v80_v5  ;;  %514 = vmatprep.subr.mxu1 %v681_v0  ;;  %v190_v33 = vld [vmem:[#allocation5] sm:$0xff]  ;;  %v326_v5 = vld [vmem:[#allocation7 + $0x78] sm:$0xff]  ;;  %v313_v18 = vld [vmem:[#allocation7 + $0x10] sm:$0xff] }
  0x31   :  { %483 = vmatprep.subr.mxu0 %v681_v0  ;;  %515 = vmatpush3.msra.mxu1 %v202_v21  ;;  %v85_v37 = vld [vmem:[%s821_s2] sm:$0x7]  ;;  %v312_v19 = vld [vmem:[#allocation7 + $0x8] sm:$0xff] }
  0x32   :  { %484 = vmatpush3.msra.mxu0 %v79_v6  ;;  %516 = vmatprep.subr.mxu1 %v681_v0  ;;  %v89_v38 = vrot.slane %v85_v37, %v88_v36  ;;  %v188_v2 = vrot.slane %v85_v37, %v187_v61  ;;  %v325_v6 = vld [vmem:[#allocation7 + $0x70] sm:$0xff]  ;;  %v311_v20 = vld [vmem:[#allocation7] sm:$0xff] }
  0x33   :  { %485 = vmatprep.subr.mxu0 %v681_v0  ;;  %517 = vmatpush3.msra.mxu1 %v201_v22  ;;  %v206_v21 = vld [vmem:[%s823_s4] sm:$0x7] }
  0x34   :  { %486 = vmatpush3.msra.mxu0 %v78_v7  ;;  %518 = vmatprep.subr.mxu1 %v681_v0  ;;  %v324_v7 = vld [vmem:[#allocation7 + $0x68] sm:$0xff]  ;;  %v210_v22 = vrot.slane %v206_v21, %v88_v36 }
  0x35   :  { %487 = vmatprep.subr.mxu0 %v681_v0  ;;  %519 = vmatpush3.msra.mxu1 %v200_v23 }
  0x36   :  { %488 = vmatpush3.msra.mxu0 %v77_v8  ;;  %520 = vmatprep.subr.mxu1 %v681_v0  ;;  %v323_v8 = vld [vmem:[#allocation7 + $0x60] sm:$0xff] }
  0x37   :  { %489 = vmatprep.subr.mxu0 %v681_v0  ;;  %521 = vmatpush3.msra.mxu1 %v199_v24 }
  0x38   :  { %490 = vmatpush3.msra.mxu0 %v76_v9  ;;  %522 = vmatprep.subr.mxu1 %v681_v0  ;;  %v322_v9 = vld [vmem:[#allocation7 + $0x58] sm:$0xff] }
  0x39   :  { %491 = vmatprep.subr.mxu0 %v681_v0  ;;  %523 = vmatpush3.msra.mxu1 %v198_v25 }
  0x3a   :  { %492 = vmatpush3.msra.mxu0 %v75_v10  ;;  %524 = vmatprep.subr.mxu1 %v681_v0  ;;  %v321_v10 = vld [vmem:[#allocation7 + $0x50] sm:$0xff] }
  0x3b   :  { %493 = vmatprep.subr.mxu0 %v681_v0  ;;  %525 = vmatpush3.msra.mxu1 %v197_v26 }
  0x3c   :  { %494 = vmatpush3.msra.mxu0 %v74_v11  ;;  %526 = vmatprep.subr.mxu1 %v681_v0  ;;  %v320_v11 = vld [vmem:[#allocation7 + $0x48] sm:$0xff] }
  0x3d   :  { %495 = vmatprep.subr.mxu0 %v681_v0  ;;  %527 = vmatpush3.msra.mxu1 %v196_v27 }
  0x3e   :  { %496 = vmatpush3.msra.mxu0 %v73_v12  ;;  %528 = vmatprep.subr.mxu1 %v681_v0  ;;  %v319_v12 = vld [vmem:[#allocation7 + $0x40] sm:$0xff] }
  0x3f   :  { %497 = vmatprep.subr.mxu0 %v681_v0  ;;  %529 = vmatpush3.msra.mxu1 %v195_v28 }
  0x40   :  { %498 = vmatpush3.msra.mxu0 %v72_v13  ;;  %530 = vmatprep.subr.mxu1 %v681_v0  ;;  %v318_v13 = vld [vmem:[#allocation7 + $0x38] sm:$0xff] }
  0x41   :  { %499 = vmatprep.subr.mxu0 %v681_v0  ;;  %531 = vmatpush3.msra.mxu1 %v194_v29 }
  0x42   :  { %500 = vmatpush3.msra.mxu0 %v71_v14  ;;  %532 = vmatprep.subr.mxu1 %v681_v0  ;;  %v317_v14 = vld [vmem:[#allocation7 + $0x30] sm:$0xff] }
  0x43   :  { %501 = vmatprep.subr.mxu0 %v681_v0  ;;  %533 = vmatpush3.msra.mxu1 %v193_v30 }
  0x44   :  { %502 = vmatpush3.msra.mxu0 %v70_v15  ;;  %534 = vmatprep.subr.mxu1 %v681_v0  ;;  %v316_v15 = vld [vmem:[#allocation7 + $0x28] sm:$0xff] }
  0x45   :  { %503 = vmatprep.subr.mxu0 %v681_v0  ;;  %535 = vmatpush3.msra.mxu1 %v192_v31 }
  0x46   :  { %504 = vmatpush3.msra.mxu0 %v69_v16  ;;  %536 = vmatprep.subr.mxu1 %v681_v0  ;;  %v315_v16 = vld [vmem:[#allocation7 + $0x20] sm:$0xff] }
  0x47   :  { %506 = vmatmul.mubr.f32.vlgmr.msra.gmra.mxu0 %v68_v17  ;;  %543 = vmatprep.subr.mxu0 %v681_v0  ;;  %v314_v17 = vld [vmem:[#allocation7 + $0x18] sm:$0xff] }
  0x48   :  { %575 = vmatprep.mubr.msk.f32.mxu0 %vm682_vm0, %v681_v0  ;;  %537 = vmatpush3.msra.mxu1 %v191_v32 }
  0x49   :  { %538 = vmatprep.subr.mxu1 %v681_v0  ;;  %544 = vmatpush3.msra.mxu0 %v326_v5 }
  0x4a   :  { %539 = vmatpush3.msra.mxu1 %v190_v33  ;;  %545 = vmatprep.subr.mxu0 %v681_v0 }
  0x4b   :  { %546 = vmatpush3.msra.mxu0 %v325_v6 }
  0x4c   :  { %547 = vmatprep.subr.mxu0 %v681_v0 }
  0x4d   :  { %548 = vmatpush3.msra.mxu0 %v324_v7 }
  0x4e   :  { %549 = vmatprep.subr.mxu0 %v681_v0 }
  0x4f   :  { %550 = vmatpush3.msra.mxu0 %v323_v8 }
  0x50   :  { %551 = vmatprep.subr.mxu0 %v681_v0 }
  0x51   :  { %552 = vmatpush3.msra.mxu0 %v322_v9 }
  0x52   :  { %553 = vmatprep.subr.mxu0 %v681_v0 }
  0x53   :  { %554 = vmatpush3.msra.mxu0 %v321_v10 }
  0x54   :  { %555 = vmatprep.subr.mxu0 %v681_v0 }
  0x55   :  { %556 = vmatpush3.msra.mxu0 %v320_v11 }
  0x56   :  { %557 = vmatprep.subr.mxu0 %v681_v0 }
  0x57   :  { %558 = vmatpush3.msra.mxu0 %v319_v12 }
  0x58   :  { %559 = vmatprep.subr.mxu0 %v681_v0 }
  0x59   :  { %560 = vmatpush3.msra.mxu0 %v318_v13 }
  0x5a   :  { %561 = vmatprep.subr.mxu0 %v681_v0 }
  0x5b   :  { %562 = vmatpush3.msra.mxu0 %v317_v14 }
  0x5c   :  { %563 = vmatprep.subr.mxu0 %v681_v0 }
  0x5d   :  { %564 = vmatpush3.msra.mxu0 %v316_v15 }
  0x5e   :  { %565 = vmatprep.subr.mxu0 %v681_v0 }
  0x5f   :  { %566 = vmatpush3.msra.mxu0 %v315_v16 }
  0x60   :  { %567 = vmatprep.subr.mxu0 %v681_v0 }
  0x61   :  { %568 = vmatpush3.msra.mxu0 %v314_v17 }
  0x62   :  { %569 = vmatprep.subr.mxu0 %v681_v0 }
  0x63   :  { %570 = vmatpush3.msra.mxu0 %v313_v18 }
  0x64   :  { %571 = vmatprep.subr.mxu0 %v681_v0 }
  0x65   :  { %572 = vmatpush3.msra.mxu0 %v312_v19 }
  0x66   :  { %573 = vmatprep.subr.mxu0 %v681_v0 }
  0x67   :  { %574 = vmatpush3.msra.mxu0 %v311_v20 }
 0x107   :  { %v156_v39 = vpop.f32.mrf.mxu0 }
 0x108   :  { %v157_v40 = vadd.f32 %v156_v39, %v89_v38 }
 0x109   :  { %v507_v41 = vpop.f32.mrf.mxu0 }
 0x10a   :  { %v160_v42 = vmax.f32 %v157_v40, 0.0 }
 0x10c   :  { %v161_v43 = vrot.slane %v160_v42, 4 }
 0x10e   :  { %v162_v44 = vadd.f32 %v161_v43, %v160_v42 }
 0x110   :  { %v163_v45 = vrot.slane %v162_v44, 2 }
 0x112   :  { %v164_v46 = vadd.f32 %v163_v45, %v162_v44 }
 0x114   :  { %v165_v47 = vrot.slane %v164_v46, 1 }
 0x116   :  { %v166_v48 = vadd.f32 %v165_v47, %v164_v46  ;;  %v309_v47 = vrot.slane %v206_v21, %v187_v61 }
 0x118   :  { %v167_v49 = vmul.f32 0.125, %v166_v48 }
 0x11a   :  { %v168_v50 = vsub.f32 %v160_v42, %v167_v49 }
 0x11c   :  { %v169_v51 = vmul.f32 %v168_v50, %v168_v50 }
 0x11e   :  { %v170_v52 = vrot.slane %v169_v51, 4 }
 0x120   :  { %v171_v53 = vadd.f32 %v170_v52, %v169_v51 }
 0x122   :  { %v172_v54 = vrot.slane %v171_v53, 2 }
 0x124   :  { %v173_v55 = vadd.f32 %v172_v54, %v171_v53 }
 0x126   :  { %v174_v56 = vrot.slane %v173_v55, 1 }
 0x128   :  { %v175_v57 = vadd.f32 %v174_v56, %v173_v55 }
 0x12a   :  { %v176_v58 = vmul.f32 0.125, %v175_v57 }
 0x12c   :  { %v177_v59 = vadd.f32 1e-05, %v176_v58 }
 0x12e   :  { %586 = vrsqrt.f32 %v177_v59 }
 0x13b   :  { %v587_v62 = vpop.eup %586 }
 0x13c   :  { %v179_v63 = vmul.f32 %v587_v62, %v85_v37 }
 0x13e   :  { %v183_v1 = vrot.slane %v179_v63, %v182_v60 }
 0x140   :  { %v184_v3 = vmul.f32 %v183_v1, %v168_v50  ;;  %v421_v50 = vld [vmem:[%s825_s6] ss:$0 sm:$0xff] }
 0x142   :  { %v189_v4 = vadd.f32 %v188_v2, %v184_v3 }
 0x144   :  { %541 = vmatmul.mubr.f32.vlgmr.msra.gmra.mxu1 %v189_v4 }
 0x204   :  { %v277_v23 = vpop.f32.mrf.mxu1 }
 0x205   :  { %v278_v24 = vadd.f32 %v277_v23, %v210_v22 }
 0x206   :  { %v542_v25 = vpop.f32.mrf.mxu1 }
 0x207   :  { %v281_v26 = vmax.f32 %v278_v24, 0.0 }
 0x209   :  { %v282_v27 = vrot.slane %v281_v26, 4 }
 0x20b   :  { %v283_v28 = vadd.f32 %v282_v27, %v281_v26 }
 0x20d   :  { %v284_v29 = vrot.slane %v283_v28, 2 }
 0x20f   :  { %v285_v30 = vadd.f32 %v284_v29, %v283_v28 }
 0x211   :  { %v286_v31 = vrot.slane %v285_v30, 1 }
 0x213   :  { %v287_v32 = vadd.f32 %v286_v31, %v285_v30 }
 0x215   :  { %v288_v33 = vmul.f32 0.125, %v287_v32 }
 0x217   :  { %v289_v0 = vsub.f32 %v281_v26, %v288_v33 }
 0x219   :  { %v290_v34 = vmul.f32 %v289_v0, %v289_v0 }
 0x21b   :  { %v291_v37 = vrot.slane %v290_v34, 4 }
 0x21d   :  { %v292_v38 = vadd.f32 %v291_v37, %v290_v34 }
 0x21f   :  { %v293_v39 = vrot.slane %v292_v38, 2 }
 0x221   :  { %v294_v40 = vadd.f32 %v293_v39, %v292_v38 }
 0x223   :  { %v295_v41 = vrot.slane %v294_v40, 1 }
 0x225   :  { %v296_v42 = vadd.f32 %v295_v41, %v294_v40 }
 0x227   :  { %v297_v36 = vmul.f32 0.125, %v296_v42 }
 0x229   :  { %v298_v43 = vadd.f32 1e-05, %v297_v36 }
 0x22b   :  { %588 = vrsqrt.f32 %v298_v43 }
 0x238   :  { %v589_v44 = vpop.eup %588 }
 0x239   :  { %v300_v45 = vmul.f32 %v589_v44, %v206_v21 }
 0x23b   :  { %v304_v46 = vrot.slane %v300_v45, %v182_v60 }
 0x23d   :  { %v305_v48 = vmul.f32 %v304_v46, %v289_v0 }
 0x23f   :  { %v310_v49 = vadd.f32 %v309_v47, %v305_v48 }
 0x241   :  { %576 = vmatmul.mubr.f32.vlgmr.msra.gmra.mxu0 %v310_v49 }
 0x301   :  { %v400_v51 = vpop.f32.mrf.mxu0 }
 0x302   :  { %v401_v52 = vadd.f32 %v421_v50, %v400_v51 }
 0x303   :  { %v577_v53 = vpop.f32.mrf.mxu0 }
 0x304   :  { %404 = vst [vmem:[#allocation8] sm:$0xff] %v401_v52 }
 0x305   :  { %661 = shalt.err (!%p658_p5)
}
 0x306   :  { %414 = dma.vmem_to_hbm [thread:$0]  %s412_s21, 128, %s826_s7, [#allocation4]  }
 0x307   :  { %674 = dma.done.wait [#allocation4], 128  }
 0x308   :  { %675 = vsyncadd [#allocation4], 4294967168 }
 0x309   :  { %418 = vsyncpa [#allocation3], 1 }
 0x30a   :  { %419 = vsyncpa [#allocation6], 1 }
 0x30b   :  { %420 = vsyncpa [#allocation4], 1 }

</bundles_post_ra>
